<compile_context>
chip_gen: v7x
topology: tpu7x:2x2x1
jax: 0.10.0
libtpu: 0.0.40
codegen_flags: <defaults>
</compile_context>

<pallas_src>
import jax
import jax.numpy as jnp
import numpy as np
from jax import lax
from jax.experimental import pallas as pl
from jax.experimental.pallas import tpu as pltpu

MAX_LENGTH = 77   # BERTTokenizer(max_length=77)
CLS_ID = 101      # bert-base-uncased [CLS]
SEP_ID = 102      # bert-base-uncased [SEP]
PAD_ID = 0        # bert-base-uncased [PAD]


def _round_up(x, m):
    return ((x + m - 1) // m) * m


def _pad_truncate_kernel(tok_ref, len_ref, out_ref):
    """out[b, :] = [CLS] tok[b, :eff] [SEP] [PAD]...   with eff = min(len[b], maxlen-2).

    tok_ref : (bb, L_pad) int32 — raw token ids ALREADY shifted right by one column in
              the wrapper, i.e. tok_ref[:, j] == raw_token[:, j-1] for j >= 1.
    len_ref : (bb, 1)     int32 — number of valid raw tokens per row.
    out_ref : (bb, maxlen) int32
    """
    bb, maxlen = out_ref.shape
    shifted = tok_ref[...][:, :maxlen]                       # (bb, maxlen); col j = raw tok j-1
    eff = jnp.clip(len_ref[...], 0, maxlen - 2)              # (bb, 1) effective content length
    pos = lax.broadcasted_iota(jnp.int32, (bb, maxlen), 1)   # output column index
    out = jnp.where(pos == 0, CLS_ID,
          jnp.where(pos <= eff, shifted,
          jnp.where(pos == eff + 1, SEP_ID, PAD_ID)))
    out_ref[...] = out.astype(out_ref.dtype)


def _pick_block_batch(batch):
    """Whole batch in one step for small B; otherwise sublane-aligned (multiple-of-8)
    batch blocks that keep >= 2 parallel grid steps (v7x megacore)."""
    for bb in (128, 64, 32, 16, 8):
        if batch % bb == 0 and batch // bb >= 2:
            return bb
    return batch


def bert_tokenizer_forward(token_ids, lengths, max_length=MAX_LENGTH):
    """Numeric part of BERTTokenizer.forward.

    token_ids: (B, L) int — raw WordPiece ids per example (no special tokens, any pad).
    lengths:   (B,)   int — number of valid tokens per example.
    returns:   (B, max_length) int32 input_ids ([CLS] ids... [SEP] [PAD]...).
    """
    # TODO(synk): the string -> WordPiece-id vocabulary lookup of BertTokenizerFast is
    # host-side string processing with no Pallas equivalent; token_ids/lengths model its
    # raw (pre-special-token, pre-padding) output.
    assert max_length >= 2
    token_ids = jnp.asarray(token_ids, jnp.int32)
    lengths = jnp.asarray(lengths, jnp.int32)
    B, L = token_ids.shape
    assert lengths.shape == (B,)

    # One-time wrapper pad: insert one leading PAD column (so column j already holds raw
    # token j-1 — no in-kernel shift) and round the width up to a lane-dense multiple of
    # 128 that also covers max_length.
    l_pad = _round_up(max(L + 1, max_length), 128)
    tok_shifted = jnp.pad(token_ids, ((0, 0), (1, l_pad - L - 1)), constant_values=PAD_ID)
    lens2d = lengths.reshape(B, 1)

    bb = _pick_block_batch(B)
    grid = (B // bb,)

    return pl.pallas_call(
        _pad_truncate_kernel,
        out_shape=jax.ShapeDtypeStruct((B, max_length), jnp.int32),
        grid=grid,
        in_specs=[
            pl.BlockSpec((bb, l_pad), lambda g: (g, 0)),
            pl.BlockSpec((bb, 1), lambda g: (g, 0)),
        ],
        out_specs=pl.BlockSpec((bb, max_length), lambda g: (g, 0)),
        compiler_params=pltpu.CompilerParams(dimension_semantics=("parallel",)),
    )(tok_shifted, lens2d)


def bert_tokenizer_encode(token_ids, lengths, vq_interface=True, max_length=MAX_LENGTH):
    """Mirrors BERTTokenizer.encode: wraps the tokens in the VQ-interface tuple."""
    tokens = bert_tokenizer_forward(token_ids, lengths, max_length)
    if not vq_interface:
        return tokens
    return (None, None, [None, None, tokens])


def bert_tokenizer_decode(text):
    """Mirrors BERTTokenizer.decode: identity."""
    return text


if __name__ == "__main__":
    key = jax.random.PRNGKey(0)
    k1, _ = jax.random.split(key)

    B, L_RAW = 2, 128
    # Synthetic pre-tokenized WordPiece ids (vocab ~30522) + per-example lengths:
    # row 0 is short (exercises padding), row 1 is longer than 75 (exercises truncation).
    token_ids = jax.random.randint(k1, (B, L_RAW), 1000, 30522, dtype=jnp.int32)
    lengths = jnp.array([5, 100], dtype=jnp.int32)

    out = jax.block_until_ready(bert_tokenizer_forward(token_ids, lengths))
    assert out.shape == (B, MAX_LENGTH), out.shape
    assert out.dtype == jnp.int32, out.dtype

    # Pure-numpy reference of BertTokenizerFast post-lookup behaviour
    # (truncation=True, max_length=77, padding='max_length').
    tok_np = np.asarray(token_ids)
    len_np = np.asarray(lengths)
    ref = np.full((B, MAX_LENGTH), PAD_ID, np.int32)
    for b in range(B):
        eff = min(int(len_np[b]), MAX_LENGTH - 2)
        ref[b, 0] = CLS_ID
        ref[b, 1:1 + eff] = tok_np[b, :eff]
        ref[b, 1 + eff] = SEP_ID
    assert np.array_equal(np.asarray(out), ref), "mismatch vs reference"

    # encode() path (vq_interface=True) exactly as in the PyTorch module.
    _, _, (_, _, toks) = bert_tokenizer_encode(token_ids, lengths)
    toks = jax.block_until_ready(toks)
    assert np.array_equal(np.asarray(toks), ref), "encode mismatch vs reference"

    print("KERNEL_OK")
</pallas_src>

<mosaic_0001>
module attributes {stable_mosaic.version = 11 : i64} {
  func.func @_pad_truncate_kernel(%arg0: i32, %arg1: memref<2x256xi32, #tpu.memory_space<vmem>>, %arg2: memref<2x1xi32, #tpu.memory_space<vmem>>, %arg3: memref<2x77xi32, #tpu.memory_space<vmem>>) attributes {dimension_semantics = [#tpu.dimension_semantics<parallel>], iteration_bounds = array<i64: 1>, scalar_prefetch = 0 : i64, scratch_operands = 0 : i64, tpu.core_type = #tpu.core_type<tc>, window_params = [{transform_indices = @transform_0, window_bounds = array<i64: 2, 256>}, {transform_indices = @transform_1, window_bounds = array<i64: 2, 1>}, {transform_indices = @transform_2, window_bounds = array<i64: 2, 77>}]} {
    %c0 = arith.constant 0 : index
    %c0_0 = arith.constant 0 : index
    %0 = vector.load %arg1[%c0, %c0_0] : memref<2x256xi32, #tpu.memory_space<vmem>>, vector<2x256xi32>
    %1 = vector.extract_strided_slice %0 {offsets = [0, 0], sizes = [2, 77], strides = [1, 1]} : vector<2x256xi32> to vector<2x77xi32>
    %c0_1 = arith.constant 0 : index
    %c0_2 = arith.constant 0 : index
    %2 = vector.load %arg2[%c0_1, %c0_2] : memref<2x1xi32, #tpu.memory_space<vmem>>, vector<2x1xi32>
    %c0_i32 = arith.constant 0 : i32
    %c75_i32 = arith.constant 75 : i32
    %3 = vector.broadcast %c0_i32 : i32 to vector<2x1xi32>
    %4 = arith.maxsi %3, %2 : vector<2x1xi32>
    %5 = vector.broadcast %c75_i32 : i32 to vector<2x1xi32>
    %6 = arith.minsi %5, %4 : vector<2x1xi32>
    %7 = tpu.iota {dimensions = array<i32: 1>} : vector<2x77xi32>
    %c0_i32_3 = arith.constant 0 : i32
    %8 = vector.broadcast %c0_i32_3 : i32 to vector<2x77xi32>
    %9 = arith.cmpi eq, %7, %8 : vector<2x77xi32>
    %10 = vector.broadcast %6 : vector<2x1xi32> to vector<2x77xi32>
    %11 = arith.cmpi sle, %7, %10 : vector<2x77xi32>
    %c1_i32 = arith.constant 1 : i32
    %12 = vector.broadcast %c1_i32 : i32 to vector<2x1xi32>
    %13 = arith.addi %6, %12 : vector<2x1xi32>
    %14 = vector.broadcast %13 : vector<2x1xi32> to vector<2x77xi32>
    %15 = arith.cmpi eq, %7, %14 : vector<2x77xi32>
    %c102_i32 = arith.constant 102 : i32
    %c0_i32_4 = arith.constant 0 : i32
    %16 = vector.broadcast %c102_i32 : i32 to vector<2x77xi32>
    %17 = vector.broadcast %c0_i32_4 : i32 to vector<2x77xi32>
    %18 = arith.select %15, %16, %17 : vector<2x77xi1>, vector<2x77xi32>
    %19 = arith.select %11, %1, %18 : vector<2x77xi1>, vector<2x77xi32>
    %c101_i32 = arith.constant 101 : i32
    %20 = vector.broadcast %c101_i32 : i32 to vector<2x77xi32>
    %21 = arith.select %9, %20, %19 : vector<2x77xi1>, vector<2x77xi32>
    %c0_5 = arith.constant 0 : index
    %c0_6 = arith.constant 0 : index
    %22 = vector.load %arg3[%c0_5, %c0_6] : memref<2x77xi32, #tpu.memory_space<vmem>>, vector<2x77xi32>
    tpu.vector_store %arg3[%c0_5, %c0_6], %21 {strides = array<i32>} : memref<2x77xi32, #tpu.memory_space<vmem>>, vector<2x77xi32>,
    return
  }
  func.func @transform_0(%arg0: i32) -> (i32, i32) {
    %c0_i32 = arith.constant 0 : i32
    %c0_i32_0 = arith.constant 0 : i32
    return %arg0, %c0_i32 : i32, i32
  }
  func.func @transform_1(%arg0: i32) -> (i32, i32) {
    %c0_i32 = arith.constant 0 : i32
    %c0_i32_0 = arith.constant 0 : i32
    return %arg0, %c0_i32 : i32, i32
  }
  func.func @transform_2(%arg0: i32) -> (i32, i32) {
    %c0_i32 = arith.constant 0 : i32
    %c0_i32_0 = arith.constant 0 : i32
    return %arg0, %c0_i32 : i32, i32
  }
}

</mosaic_0001>

<bundles_post_ra>
// kernel: tpu_custom_call.1
= control target key start
LH: loop header
LB: loop body
LE: loop exit
PB: predicated region body
PF: predicated region fallthrough
CT: control target
= control target key end

     0   :  { %7 = vsyncpa [#allocation3], 0  ;;  %s159_s0 = inlined_call_operand.hbm [shape: s32[2,256], index: 0, kind: input, shape index: {}]   ;;  %s160_s1 = inlined_call_operand.vmem [shape: s32[2,1], index: 1, kind: input, shape index: {}]   ;;  %s161_s2 = inlined_call_operand.hbm [shape: s32[2,77], index: 2, kind: output, shape index: {}]  }
   0x1   :  { %8 = vsyncpa [#allocation4], 0  ;;  %s114_s9 = smov [#allocation2]   ;;  %s66_s13 = scalar_lea.hbm %s159_s0, 64 }
   0x2   :  { %s15_s10 = sshll.u32 %s114_s9, 4  ;;  %p67_p0 = scmp.ne.s32.totalorder %s159_s0, %s66_s13  ;;  %s16_s10 = int_to_ptr.vmem [resolvable:$true] %s15_s10 }
   0x3   :  { %p70_p1 = scmp.lt.u32.totalorder %s66_s13, %s159_s0 }
   0x5   :  { %p72_p2 = pnand %p70_p1, %p67_p0 }
   0x7   :  { %75 = shalt.err (!%p72_p2)
}
   0x8   :  { %s76_s18 = scalar_lea.vmem %s16_s10, 64  ;;  %p81_p4 = scmp.lt.s32.totalorder %s16_s10, %s16_s10 }
   0x9   :  { %p77_p3 = scmp.ne.s32.totalorder %s16_s10, %s76_s18  ;;  %p82_p5 = scmp.lt.s32.totalorder %s76_s18, %s76_s18 }
   0xb   :  { %p83_p6 = por %p82_p5, %p81_p4 }
   0xd   :  { %p84_p7 = pnand %p83_p6, %p77_p3 }
   0xf   :  { %87 = shalt.err (!%p84_p7)
}
  0x10   :  { %18 = dma.hbm_to_vmem [thread:$0]  %s159_s0, 64, %s16_s10, [#allocation3]  }
  0x11   :  { %110 = dma.done.wait [#allocation3], 64  }
  0x12   :  { %111 = vsyncadd [#allocation3], 4294967232  ;;  %v115_v0 = vmov 0   ;;  %v25_v1 = vld [vmem:[%s160_s1] sm:$0x3]  ;;  %v30_v5 = vlaneseq  ;;  %s116_s0 = smov [#allocation5]  }
  0x13   :  { %65 = vset.pattern.permute.xlu0 %v115_v0  ;;  %vm26_vm0 = vcmp.gt.s32.totalorder %v25_v1, 0  ;;  %v24_v8 = vld [vmem:[#allocation2] sm:$0xf]  ;;  %s53_s23 = sshll.u32 %s116_s0, 4  ;;  %vm45_vm5 = vcmask 623616   ;;  %s54_s23 = int_to_ptr.vmem [resolvable:$true] %s53_s23 }
  0x14   :  { %v27_v2 = vsel %vm26_vm0, %v25_v1, 0  ;;  %v31_v6 = vand.u32 127, %v30_v5  ;;  %s88_s1 = scalar_lea.vmem %s54_s23, 32  ;;  %p93_p9 = scmp.lt.s32.totalorder %s54_s23, %s54_s23 }
  0x15   :  { %vm28_vm1 = vcmp.lt.s32.totalorder %v27_v2, 75  ;;  %p89_p8 = scmp.ne.s32.totalorder %s54_s23, %s88_s1  ;;  %p94_p10 = scmp.lt.s32.totalorder %s88_s1, %s88_s1 }
  0x16   :  { %v29_v3 = vsel %vm28_vm1, %v27_v2, 75  ;;  %vm32_vm3 = vcmp.eq.s32.totalorder %v31_v6, 0 }
  0x17   :  { %v37_v4 = vadd.s32 1, %v29_v3  ;;  %p95_p11 = por %p94_p10, %p93_p9 }
  0x19   :  { %39 = vperm.xlu0 %65, %v37_v4   ;;  %p96_p12 = pnand %p95_p11, %p89_p8 }
  0x1d   :  { %34 = vperm.xlu0 %65, %v29_v3  }
  0x98   :  { %v40_v7 = vpop.permute.xlu0 %39 }
  0x99   :  { %vm41_vm2 = vcmp.eq.s32.totalorder %v31_v6, %v40_v7 }
  0x9a   :  { %v42_v10 = vsel %vm41_vm2, 102, %v115_v0 }
  0x9c   :  { %v35_v9 = vpop.permute.xlu0 %34 }
  0x9d   :  { %vm36_vm4 = vcmp.le.s32.totalorder %v31_v6, %v35_v9 }
  0x9e   :  { %v43_v11 = vsel %vm36_vm4, %v24_v8, %v42_v10 }
  0x9f   :  { %v44_v12 = vsel %vm32_vm3, 101, %v43_v11 }
  0xa0   :  { %46 = vst.msk [vmem:[#allocation5] sm:$0x3] %vm45_vm5, %v44_v12 }
  0xa1   :  { %99 = shalt.err (!%p96_p12)
}
  0xa2   :  { %s100_s26 = scalar_lea.hbm %s161_s2, 32 }
  0xa3   :  { %p101_p13 = scmp.ne.s32.totalorder %s161_s2, %s100_s26  ;;  %p104_p0 = scmp.lt.u32.totalorder %s100_s26, %s161_s2 }
  0xa5   :  { %p106_p1 = pnand %p104_p0, %p101_p13 }
  0xa7   :  { %109 = shalt.err (!%p106_p1)
}
  0xa8   :  { %56 = dma.vmem_to_hbm [thread:$0]  %s54_s23, 32, %s161_s2, [#allocation4]  }
  0xa9   :  { %112 = dma.done.wait [#allocation4], 32  }
  0xaa   :  { %113 = vsyncadd [#allocation4], 4294967264 }
  0xab   :  { %60 = vsyncpa [#allocation3], 1 }
  0xac   :  { %61 = vsyncpa [#allocation4], 1 }

</bundles_post_ra>
